<compile_context>
chip_gen: v7x
topology: tpu7x:2x2x1
jax: 0.10.0
libtpu: 0.0.40
codegen_flags: <defaults>
</compile_context>

<pallas_src>
import math

import jax
import jax.numpy as jnp
from jax.experimental import pallas as pl
from jax.experimental.pallas import tpu as pltpu

_MIB = 1024 * 1024


def _vmem_capacity_bytes():
    """Physical VMEM per core; conservative fallback if the query fails."""
    try:
        return int(pltpu.get_tpu_info().vmem_capacity_bytes)
    except Exception:
        return 64 * _MIB  # v7x per-TC value: safe lower bound for all gens


def _lane_pack_factor(n, cl):
    """How many batch rows to pack along the lane axis.

    Returns k such that k*cl is a multiple of 128 (lane-dense stores) and
    k divides n (so the wrapper reshape is a pure flatten); 1 if impossible.
    """
    if cl % 128 == 0 or cl >= 512:
        return 1
    base = 128 // math.gcd(cl, 128)  # smallest k with k*cl % 128 == 0
    k = base
    while k * 2 * cl <= 512:         # grow toward ~512 lanes per row
        k *= 2
    while k > 1 and n % k != 0:
        k //= 2
    if k < base:                     # no longer lane-dense -> not worth it
        return 1
    return k


def _pick_batch_tile(n_rows, row_bytes, target_block_bytes):
    """Rows (sublane axis) per grid step."""
    if n_rows <= 8:
        return n_rows                # block == full extent -> always legal
    nb = max(8, (target_block_bytes // max(1, row_bytes)) // 8 * 8)
    if n_rows >= 16:
        # keep at least 2 grid steps so both v7x TensorCores get work
        half = ((-(-n_rows // 2)) + 7) // 8 * 8
        nb = min(nb, half)
    nb = min(nb, max(8, (n_rows // 8) * 8))
    return nb


def _ca_kernel(x_ref, pw_ref, b_ref, expand_ref, o_ref):
    """Fused CALayer on a (NB, K*CL) lane-dense block.

    x_ref      : (NB, KCL)  NB (packed) batch rows, channel-major flatten
    pw_ref     : (KCL, KC)  folded avg-pool * (1/L) * conv weight (block-diag)
    b_ref      : (1, KC)    bias, lane-major (tiled over the pack factor)
    expand_ref : (KC, KCL)  0/1 expansion matrix (broadcast scale over L)
    o_ref      : (NB, KCL)  rescaled output
    """
    x = x_ref[...].astype(jnp.float32)                                     # (NB, KCL)
    # mean-over-L + 1x1 conv folded into one skinny MXU matmul.
    y = jnp.dot(x, pw_ref[...], preferred_element_type=jnp.float32) + b_ref[...]
    # ReLU then Sigmoid, as in the nn.Sequential.
    y = jax.nn.sigmoid(jnp.maximum(y, 0.0))                                # (NB, KC)
    # Broadcast the per-channel scale back onto the lane axis (one-hot matmul).
    scale = jnp.dot(y, expand_ref[...], preferred_element_type=jnp.float32)
    o_ref[...] = (x * scale).astype(o_ref.dtype)


def _ca_kernel_sliced(x_ref, pw_ref, b_ref, o_ref):
    """Variant for L % 128 == 0 (no lane packing): skip the expand matmul and
    do per-channel 128-aligned lane-sliced multiplies instead."""
    cl = x_ref.shape[1]
    c = pw_ref.shape[1]
    l = cl // c
    x = x_ref[...].astype(jnp.float32)                                     # (NB, CL)
    y = jnp.dot(x, pw_ref[...], preferred_element_type=jnp.float32) + b_ref[...]
    y = jax.nn.sigmoid(jnp.maximum(y, 0.0))                                # (NB, C)
    for ch in range(c):  # static, tile-aligned slices -> unmasked stores
        o_ref[:, ch * l:(ch + 1) * l] = (
            x[:, ch * l:(ch + 1) * l] * y[:, ch:ch + 1]).astype(o_ref.dtype)


@jax.jit
def ca_layer(x, w, b):
    """CALayer forward.

    x: (N, C, L) float, w: (C, C, 1) Conv1d weight, b: (C,) bias -> (N, C, L).
    """
    N, C, L = x.shape
    CL = C * L
    out_dtype = x.dtype
    itemsize = jnp.dtype(out_dtype).itemsize

    # Fold AdaptiveAvgPool1d(1) (sum over L, then 1/L) and the 1x1 conv into a
    # single (CL, C) matrix so the kernel does one matmul instead of two.
    eye = jnp.eye(C, dtype=jnp.float32)
    expand = jnp.repeat(eye, L, axis=1)                  # (C, CL): E[c, c*L+l] = 1
    pool = expand.T                                      # (CL, C): per-channel sum
    w_t = w.reshape(C, C).T.astype(jnp.float32)          # (C_in, C_out)
    pw = jnp.dot(pool, w_t) * (1.0 / L)                  # (CL, C)
    b_row = b.reshape(1, C).astype(jnp.float32)          # lane-major bias

    # Lane packing: pack k batch rows along the lane axis when CL < 128-dense.
    k = _lane_pack_factor(N, CL)
    Np, KCL, KC = N // k, k * CL, k * C
    x_packed = x.reshape(Np, KCL)
    if k > 1:
        eye_k = jnp.eye(k, dtype=jnp.float32)
        pw = jnp.kron(eye_k, pw)                         # (KCL, KC) block-diag
        expand = jnp.kron(eye_k, expand)                 # (KC, KCL) block-diag
        b_row = jnp.tile(b_row, (1, k))                  # (1, KC)

    # Block sizing + explicit VMEM budget, derived from the chip generation.
    vmem_cap = _vmem_capacity_bytes()
    target_block_bytes = min(8 * _MIB, max(2 * _MIB, vmem_cap // 12))
    nb = _pick_batch_tile(Np, KCL * itemsize, target_block_bytes)
    block_bytes = nb * KCL * max(itemsize, 4)
    vmem_limit = int(min(vmem_cap * 3 // 4, max(32 * _MIB, 8 * block_bytes)))

    grid = (pl.cdiv(Np, nb),)        # no wrapper pad; tail block writes discarded
    x_spec = pl.BlockSpec((nb, KCL), lambda i: (i, 0))
    out_spec = pl.BlockSpec((nb, KCL), lambda i: (i, 0))

    def param_spec(shape):
        return pl.BlockSpec(shape, lambda i: (0, 0))

    cparams = pltpu.CompilerParams(dimension_semantics=("parallel",),
                                   vmem_limit_bytes=vmem_limit)

    use_sliced = (k == 1) and (L % 128 == 0)
    if use_sliced:
        out_packed = pl.pallas_call(
            _ca_kernel_sliced,
            out_shape=jax.ShapeDtypeStruct((Np, KCL), out_dtype),
            grid_spec=pltpu.PrefetchScalarGridSpec(
                num_scalar_prefetch=0,
                grid=grid,
                in_specs=[x_spec,
                          param_spec((KCL, KC)),
                          param_spec((1, KC))],
                out_specs=out_spec),
            compiler_params=cparams,
        )(x_packed, pw, b_row)
    else:
        out_packed = pl.pallas_call(
            _ca_kernel,
            out_shape=jax.ShapeDtypeStruct((Np, KCL), out_dtype),
            grid_spec=pltpu.PrefetchScalarGridSpec(
                num_scalar_prefetch=0,
                grid=grid,
                in_specs=[x_spec,
                          param_spec((KCL, KC)),
                          param_spec((1, KC)),
                          param_spec((KC, KCL))],
                out_specs=out_spec),
            compiler_params=cparams,
        )(x_packed, pw, b_row, expand)

    return out_packed.reshape(N, C, L)


def gaze_latent_branch(latent_vector, ca_w, ca_b):
    """Latent path of GazeEstimationAbstractModel_img_with_latent.forward:
    view (b, c, h, w) -> (b, h, w), take rows 2:6, CALayer, flatten."""
    bsz, c, h, w = latent_vector.shape
    lv = latent_vector.reshape(bsz, h, w)
    # TODO(synk): fuse this channel slice into the pallas_call BlockSpec (row
    # offset 2 on the h axis) to drop the extra XLA slice op / HBM round trip.
    lat = lv[:, 2:6, :]                       # (b, 4, w)
    lat = ca_layer(lat, ca_w, ca_b)
    return lat.reshape(bsz, -1)


def ca_layer_ref(x, w, b):
    """Pure-JAX reference matching the PyTorch CALayer forward."""
    y = jnp.mean(x, axis=-1, keepdims=True)                       # (N, C, 1)
    w2 = w.reshape(w.shape[0], w.shape[1])                        # (C_out, C_in)
    y = jnp.einsum('oc,ncl->nol', w2, y) + b.reshape(1, -1, 1)    # (N, C, 1)
    y = jax.nn.sigmoid(jnp.maximum(y, 0.0))
    return x * y


if __name__ == "__main__":
    key = jax.random.PRNGKey(0)
    kx, kw, kb, kl, kx2, kx3 = jax.random.split(key, 6)

    # Case 1: GazeModel shapes -- CALayer(channel=4) on the sliced latent rows.
    N, C, L = 2, 4, 16
    x = jax.random.normal(kx, (N, C, L), dtype=jnp.float32)
    w = jax.random.normal(kw, (C, C, 1), dtype=jnp.float32) * 0.1   # Conv1d weight
    b = jax.random.normal(kb, (C,), dtype=jnp.float32) * 0.1        # Conv1d bias

    out = ca_layer(x, w, b)
    jax.block_until_ready(out)
    ref = ca_layer_ref(x, w, b)
    assert out.shape == (N, C, L)
    assert jnp.allclose(out, ref, atol=1e-5, rtol=1e-5), "CALayer mismatch vs reference"

    # Case 2: batch not a multiple of the tile -> exercises the pad-free tail
    # block path plus lane packing and a multi-step (megacore-friendly) grid.
    N2 = 100
    x2 = jax.random.normal(kx2, (N2, C, L), dtype=jnp.float32)
    out2 = ca_layer(x2, w, b)
    jax.block_until_ready(out2)
    assert jnp.allclose(out2, ca_layer_ref(x2, w, b), atol=1e-5, rtol=1e-5), \
        "CALayer mismatch (tail block / lane packing)"

    # Case 3: L a multiple of 128 -> exercises the expand-free sliced-store kernel.
    L3 = 128
    x3 = jax.random.normal(kx3, (16, C, L3), dtype=jnp.float32)
    out3 = ca_layer(x3, w, b)
    jax.block_until_ready(out3)
    assert jnp.allclose(out3, ca_layer_ref(x3, w, b), atol=1e-5, rtol=1e-5), \
        "CALayer mismatch (sliced-store kernel)"

    # Latent branch of GazeEstimationModel_img_with_Latent (slice channels 2:6,
    # CALayer, flatten) on a toy latent_vector (b, 1, h, w).
    latent = jax.random.normal(kl, (N, 1, 8, L), dtype=jnp.float32)
    lat_out = gaze_latent_branch(latent, w, b)
    jax.block_until_ready(lat_out)
    lat_ref = ca_layer_ref(latent.reshape(N, 8, L)[:, 2:6, :], w, b).reshape(N, -1)
    assert jnp.allclose(lat_out, lat_ref, atol=1e-5, rtol=1e-5), "latent branch mismatch"

    print("KERNEL_OK")
</pallas_src>

<mosaic_0001>
module attributes {stable_mosaic.version = 11 : i64} {
  func.func @_ca_kernel(%arg0: i32, %arg1: memref<1x128xf32, #tpu.memory_space<vmem>>, %arg2: memref<128x8xf32, #tpu.memory_space<vmem>>, %arg3: memref<1x8xf32, #tpu.memory_space<vmem>>, %arg4: memref<8x128xf32, #tpu.memory_space<vmem>>, %arg5: memref<1x128xf32, #tpu.memory_space<vmem>>) attributes {dimension_semantics = [#tpu.dimension_semantics<parallel>], iteration_bounds = array<i64: 1>, scalar_prefetch = 0 : i64, scratch_operands = 0 : i64, tpu.core_type = #tpu.core_type<tc>, window_params = [{transform_indices = @transform_0, window_bounds = array<i64: 1, 128>}, {pipeline_mode = #tpu.pipeline_mode<synchronous>, transform_indices = @transform_1, window_bounds = array<i64: 128, 8>}, {pipeline_mode = #tpu.pipeline_mode<synchronous>, transform_indices = @transform_2, window_bounds = array<i64: 1, 8>}, {pipeline_mode = #tpu.pipeline_mode<synchronous>, transform_indices = @transform_3, window_bounds = array<i64: 8, 128>}, {transform_indices = @transform_4, window_bounds = array<i64: 1, 128>}]} {
    %c0 = arith.constant 0 : index
    %c0_0 = arith.constant 0 : index
    %0 = vector.load %arg1[%c0, %c0_0] : memref<1x128xf32, #tpu.memory_space<vmem>>, vector<1x128xf32>
    %c0_1 = arith.constant 0 : index
    %c0_2 = arith.constant 0 : index
    %1 = vector.load %arg2[%c0_1, %c0_2] : memref<128x8xf32, #tpu.memory_space<vmem>>, vector<128x8xf32>
    %cst = arith.constant dense<0.000000e+00> : vector<1x8xf32>
    %2 = tpu.matmul %0, %1, %cst {dimension_numbers = #tpu.dot_dimension_numbers<[1], [0], [0], [1], [0, 0, 1, 1], [], []>} : vector<1x128xf32>, vector<128x8xf32>, vector<1x8xf32> -> vector<1x8xf32>
    %c0_3 = arith.constant 0 : index
    %c0_4 = arith.constant 0 : index
    %3 = vector.load %arg3[%c0_3, %c0_4] : memref<1x8xf32, #tpu.memory_space<vmem>>, vector<1x8xf32>
    %4 = arith.addf %2, %3 : vector<1x8xf32>
    %cst_5 = arith.constant 0.000000e+00 : f32
    %5 = vector.broadcast %cst_5 : f32 to vector<1x8xf32>
    %6 = arith.maximumf %4, %5 : vector<1x8xf32>
    %7 = arith.negf %6 : vector<1x8xf32>
    %8 = math.exp %7 : vector<1x8xf32>
    %cst_6 = arith.constant 1.000000e+00 : f32
    %9 = vector.broadcast %cst_6 : f32 to vector<1x8xf32>
    %10 = arith.addf %9, %8 : vector<1x8xf32>
    %11 = arith.divf %9, %10 : vector<1x8xf32>
    %c0_7 = arith.constant 0 : index
    %c0_8 = arith.constant 0 : index
    %12 = vector.load %arg4[%c0_7, %c0_8] : memref<8x128xf32, #tpu.memory_space<vmem>>, vector<8x128xf32>
    %cst_9 = arith.constant dense<0.000000e+00> : vector<1x128xf32>
    %13 = tpu.matmul %11, %12, %cst_9 {dimension_numbers = #tpu.dot_dimension_numbers<[1], [0], [0], [1], [0, 0, 1, 1], [], []>} : vector<1x8xf32>, vector<8x128xf32>, vector<1x128xf32> -> vector<1x128xf32>
    %14 = arith.mulf %0, %13 : vector<1x128xf32>
    %c0_10 = arith.constant 0 : index
    %c0_11 = arith.constant 0 : index
    %15 = vector.load %arg5[%c0_10, %c0_11] : memref<1x128xf32, #tpu.memory_space<vmem>>, vector<1x128xf32>
    tpu.vector_store %arg5[%c0_10, %c0_11], %14 {strides = array<i32>} : memref<1x128xf32, #tpu.memory_space<vmem>>, vector<1x128xf32>,
    return
  }
  func.func @transform_0(%arg0: i32) -> (i32, i32) {
    %c0_i32 = arith.constant 0 : i32
    %c0_i32_0 = arith.constant 0 : i32
    return %arg0, %c0_i32 : i32, i32
  }
  func.func @transform_1(%arg0: i32) -> (i32, i32) {
    %c0_i32 = arith.constant 0 : i32
    %c0_i32_0 = arith.constant 0 : i32
    %c0_i32_1 = arith.constant 0 : i32
    return %c0_i32, %c0_i32_0 : i32, i32
  }
  func.func @transform_2(%arg0: i32) -> (i32, i32) {
    %c0_i32 = arith.constant 0 : i32
    %c0_i32_0 = arith.constant 0 : i32
    %c0_i32_1 = arith.constant 0 : i32
    return %c0_i32, %c0_i32_0 : i32, i32
  }
  func.func @transform_3(%arg0: i32) -> (i32, i32) {
    %c0_i32 = arith.constant 0 : i32
    %c0_i32_0 = arith.constant 0 : i32
    %c0_i32_1 = arith.constant 0 : i32
    return %c0_i32, %c0_i32_0 : i32, i32
  }
  func.func @transform_4(%arg0: i32) -> (i32, i32) {
    %c0_i32 = arith.constant 0 : i32
    %c0_i32_0 = arith.constant 0 : i32
    return %arg0, %c0_i32 : i32, i32
  }
}

</mosaic_0001>

<bundles_post_ra>
// kernel: ca_layer.1
= control target key start
LH: loop header
LB: loop body
LE: loop exit
PB: predicated region body
PF: predicated region fallthrough
CT: control target
= control target key end

     0   :  { %v285_v0 = vmov 0.0|0.0   ;;  %vm286_vm0 = vmmov 0   ;;  %v287_v4 = vmov 0.0   ;;  %vm113_vm1 = vcmask 64512   ;;  %s373_s1 = inlined_call_operand.vmem [shape: f32[128,8], index: 1, kind: input, shape index: {}]   ;;  %s374_s0 = inlined_call_operand.vmem [shape: f32[1,128], index: 0, kind: input, shape index: {}]   ;;  %s375_s3 = inlined_call_operand.vmem [shape: f32[8,128], index: 3, kind: input, shape index: {}]   ;;  %s376_s2 = inlined_call_operand.vmem [shape: f32[1,8], index: 2, kind: input, shape index: {}]   ;;  %s377_s4 = inlined_call_operand.vmem [shape: f32[1,128], index: 4, kind: output, shape index: {}]  }
   0x1   :  { %254 = vmatprep.subr.bf16.mxu0 %v285_v0  ;;  %v18_v1 = vld [vmem:[%s373_s1] sm:$0xff]  ;;  %v19_v2 = vld [vmem:[%s373_s1 + $0x8] sm:$0xff]  ;;  %v20_v3 = vld [vmem:[%s373_s1 + $0x10] sm:$0xff]  ;;  %246 = vmatprep.mubr.msk.f32.mxu0 %vm286_vm0, %v287_v4 }
   0x2   :  { %v255_v5 = vpack.c.bf16 %v19_v2, %v18_v1  ;;  %v21_v6 = vld [vmem:[%s373_s1 + $0x18] sm:$0xff]  ;;  %249 = vmatprep.subr.mxu1 %v287_v4  ;;  %251 = vmatprep.mubr.msk.f32.mxu1 %vm286_vm0, %v287_v4  ;;  %v22_v8 = vld [vmem:[%s373_s1 + $0x20] sm:$0xff]  ;;  %v23_v9 = vld [vmem:[%s373_s1 + $0x28] sm:$0xff] }
   0x3   :  { %v258_v7 = vpack.c.bf16 %v21_v6, %v20_v3  ;;  %v261_v10 = vpack.c.bf16 %v23_v9, %v22_v8  ;;  %v24_v11 = vld [vmem:[%s373_s1 + $0x30] sm:$0xff]  ;;  %v25_v12 = vld [vmem:[%s373_s1 + $0x38] sm:$0xff]  ;;  %v26_v14 = vld [vmem:[%s373_s1 + $0x40] sm:$0xff] }
   0x4   :  { %256 = vmatpush3.bf16.msra.mxu0 %v255_v5  ;;  %v264_v13 = vpack.c.bf16 %v25_v12, %v24_v11  ;;  %v27_v15 = vld [vmem:[%s373_s1 + $0x48] sm:$0xff]  ;;  %v28_v17 = vld [vmem:[%s373_s1 + $0x50] sm:$0xff]  ;;  %v29_v18 = vld [vmem:[%s373_s1 + $0x58] sm:$0xff] }
   0x5   :  { %257 = vmatprep.subr.bf16.mxu0 %v285_v0  ;;  %v267_v16 = vpack.c.bf16 %v27_v15, %v26_v14  ;;  %v270_v19 = vpack.c.bf16 %v29_v18, %v28_v17  ;;  %v30_v20 = vld [vmem:[%s373_s1 + $0x60] sm:$0xff]  ;;  %v31_v21 = vld [vmem:[%s373_s1 + $0x68] sm:$0xff]  ;;  %v32_v23 = vld [vmem:[%s373_s1 + $0x70] sm:$0xff] }
   0x6   :  { %v273_v22 = vpack.c.bf16 %v31_v21, %v30_v20  ;;  %v33_v24 = vld [vmem:[%s373_s1 + $0x78] sm:$0xff]  ;;  %v17_v26 = vld [vmem:[%s374_s0] sm:$0x1] }
   0x7   :  { %v276_v25 = vpack.c.bf16 %v33_v24, %v32_v23  ;;  %v112_v27 = vld [vmem:[%s375_s3] sm:$0xff] }
   0x8   :  { %259 = vmatpush3.bf16.msra.mxu0 %v258_v7  ;;  %250 = vmatpush3.msra.mxu1 %v112_v27  ;;  %v34_v28 = vld [vmem:[%s376_s2] sm:$0x1] }
   0x9   :  { %260 = vmatprep.subr.bf16.mxu0 %v285_v0 }
   0xc   :  { %262 = vmatpush3.bf16.msra.mxu0 %v261_v10 }
   0xd   :  { %263 = vmatprep.subr.bf16.mxu0 %v285_v0 }
  0x10   :  { %265 = vmatpush3.bf16.msra.mxu0 %v264_v13 }
  0x11   :  { %266 = vmatprep.subr.bf16.mxu0 %v285_v0 }
  0x14   :  { %268 = vmatpush3.bf16.msra.mxu0 %v267_v16 }
  0x15   :  { %269 = vmatprep.subr.bf16.mxu0 %v285_v0 }
  0x18   :  { %271 = vmatpush3.bf16.msra.mxu0 %v270_v19 }
  0x19   :  { %272 = vmatprep.subr.bf16.mxu0 %v285_v0 }
  0x1c   :  { %274 = vmatpush3.bf16.msra.mxu0 %v273_v22 }
  0x1d   :  { %275 = vmatprep.subr.bf16.mxu0 %v285_v0 }
  0x20   :  { %277 = vmatpush3.bf16.msra.mxu0 %v276_v25 }
  0x23   :  { %247 = vmatmul.mubr.f32.vlgmr.msra.gmra.mrb[0].mxu0 %v17_v26 }
  0xf6   :  { %v101_v29 = vpop.f32.mrb[0].mxu0 }
  0xf7   :  { %v102_v30 = vadd.f32 %v101_v29, %v34_v28  ;;  %v248_v31 = vpop.f32.mrb[1].mxu0 }
  0xf9   :  { %v105_v32 = vmax.f32 %v102_v30, 0.0 }
  0xfb   :  { %v193_v33 = vmul.f32 -1.442695, %v105_v32 }
  0xfd   :  { %281 = vpow2.f32 %v193_v33 }
 0x107   :  { %v282_v34 = vpop.eup %281 }
 0x108   :  { %v109_v35 = vadd.f32 1.0, %v282_v34 }
 0x10a   :  { %283 = vrcp.f32 %v109_v35 }
 0x114   :  { %v284_v36 = vpop.eup %283 }
 0x115   :  { %252 = vmatmul.mubr.msk.f32.vlgmr.msra.gmra.mrb[0].mxu1 %vm113_vm1, %v284_v36 }
 0x1e8   :  { %v183_v37 = vpop.f32.mrb[0].mxu1 }
 0x1e9   :  { %v187_v38 = vmul.f32 %v183_v37, %v17_v26  ;;  %v253_v39 = vpop.f32.mrb[1].mxu1 }
 0x1eb   :  { %188 = vst [vmem:[%s377_s4] sm:$0x1] %v187_v38 }

</bundles_post_ra>
